<compile_context>
chip_gen: v6e
topology: v6e:2x2x1
jax: 0.10.0
libtpu: 0.0.40
codegen_flags: <defaults>
</compile_context>

<pallas_src>
import functools

import jax
import jax.numpy as jnp
from jax.experimental import pallas as pl
from jax.experimental.pallas import tpu as pltpu


# ----------------------------- kernels ------------------------------------ #

def _forward_kernel(x_ref, w_ref, b_ref, probs_ref):
    """probs = softmax(x @ W + b, axis=1)  (the y is None branch), one batch tile."""
    logits = jnp.dot(x_ref[...], w_ref[...],
                     preferred_element_type=jnp.float32) + b_ref[...]
    m = jnp.max(logits, axis=1, keepdims=True)
    e = jnp.exp(logits - m)
    denom = jnp.sum(e, axis=1, keepdims=True)
    # divide on the EUP slot instead of a long VPU divide sequence
    probs_ref[...] = (e * pl.reciprocal(denom, approx=True)).astype(probs_ref.dtype)


def _loss_kernel(x_ref, w_ref, b_ref, y_ref, loss_ref, *, batch, block_b):
    """mean cross-entropy over all tiles; loss_ref is a resident (1,1) accumulator."""
    i = pl.program_id(0)

    @pl.when(i == 0)
    def _init():
        loss_ref[...] = jnp.zeros_like(loss_ref)

    logits = jnp.dot(x_ref[...], w_ref[...],
                     preferred_element_type=jnp.float32) + b_ref[...]
    m = jnp.max(logits, axis=1, keepdims=True)
    lse = jnp.log(jnp.sum(jnp.exp(logits - m), axis=1, keepdims=True)) + m
    logp = logits - lse                                        # (TB, C) log_softmax

    # one-hot built in-kernel from the int32 labels (no HBM one-hot stream)
    cls = jax.lax.broadcasted_iota(jnp.int32, logp.shape, 1)   # (TB, C)
    onehot = (cls == y_ref[...]).astype(jnp.float32)           # y_ref is (TB, 1)
    nll = -jnp.sum(onehot * logp, axis=1, keepdims=True)       # (TB, 1)

    # mask rows past the true batch (padded tail of the last tile)
    row = i * block_b + jax.lax.broadcasted_iota(jnp.int32, nll.shape, 0)
    nll = jnp.where(row < batch, nll, 0.0)

    loss_ref[...] = loss_ref[...] + jnp.sum(nll, axis=0, keepdims=True)

    @pl.when(i == pl.num_programs(0) - 1)
    def _finish():
        loss_ref[...] = loss_ref[...] * (1.0 / batch)          # mean over true B


# ----------------------------- wrappers ------------------------------------ #

def _pick_block_b(batch, dim):
    """Batch tile: multiple of 8, capped at 512 rows, shrunk if D is very large
    so one double-buffered x tile stays <= ~8 MiB (safe on every VMEM limit)."""
    tb = min(512, batch)
    budget_rows = max(8, (8 * 1024 * 1024) // (2 * 4 * max(dim, 1)))
    tb = min(tb, budget_rows)
    tb = max(8, ((tb + 7) // 8) * 8)
    return tb


def multi_torch_model(x, w, b, y=None, *, block_b=None):
    """Mirrors MultiTorchmodel.forward.

    x: (B, D) float32
    w: (D, 3) float32   (transposed nn.Linear weight)
    b: (3,)   float32
    y: optional (B,) int class labels -> returns scalar cross-entropy loss
    """
    B, D = x.shape
    C = w.shape[1]
    b2 = b.reshape(1, C).astype(jnp.float32)

    if block_b is None:
        block_b = _pick_block_b(B, D)
    num_tiles = pl.cdiv(B, block_b)

    x_spec = pl.BlockSpec((block_b, D), lambda i: (i, 0))
    w_spec = pl.BlockSpec((D, C), lambda i: (0, 0))       # replicated across tiles
    b_spec = pl.BlockSpec((1, C), lambda i: (0, 0))       # replicated across tiles

    if y is None:
        return pl.pallas_call(
            _forward_kernel,
            out_shape=jax.ShapeDtypeStruct((B, C), jnp.float32),
            grid=(num_tiles,),
            in_specs=[x_spec, w_spec, b_spec],
            out_specs=pl.BlockSpec((block_b, C), lambda i: (i, 0)),
            compiler_params=pltpu.CompilerParams(
                dimension_semantics=("parallel",)),       # 2 TCs on v7x
        )(x, w, b2)

    # cross-entropy path: stream int32 labels, reduce across tiles in-kernel
    y2 = y.astype(jnp.int32).reshape(B, 1)
    kernel = functools.partial(_loss_kernel, batch=B, block_b=block_b)
    loss = pl.pallas_call(
        kernel,
        out_shape=jax.ShapeDtypeStruct((1, 1), jnp.float32),
        grid=(num_tiles,),
        in_specs=[x_spec, w_spec, b_spec,
                  pl.BlockSpec((block_b, 1), lambda i: (i, 0))],
        out_specs=pl.BlockSpec((1, 1), lambda i: (0, 0)),  # resident accumulator
        compiler_params=pltpu.CompilerParams(
            dimension_semantics=("arbitrary",)),           # output revisited
    )(x, w, b2, y2)
    return loss[0, 0]


# ------------------------------- main -------------------------------------- #

if __name__ == "__main__":
    key = jax.random.PRNGKey(0)
    kx, kw, kb, ky = jax.random.split(key, 4)

    # B not a multiple of the tile -> exercises the grid, accumulator and tail mask.
    B, D, C = 13, 32, 3
    BLOCK_B = 8

    # Deterministic synthetic parameters (shapes per nn.Linear(input_size, 3)).
    # PyTorch stores weight as (3, D); we keep its transpose (D, 3).
    bound = 1.0 / (D ** 0.5)
    w = jax.random.uniform(kw, (D, C), jnp.float32, minval=-bound, maxval=bound)
    b = jax.random.uniform(kb, (C,), jnp.float32, minval=-bound, maxval=bound)

    x = jax.random.normal(kx, (B, D), jnp.float32)
    y = jax.random.randint(ky, (B,), 0, C, dtype=jnp.int32)

    # Inference branch (y is None): softmax probabilities.
    probs = jax.block_until_ready(multi_torch_model(x, w, b, block_b=BLOCK_B))

    # Training branch (y given): scalar cross-entropy loss on logits.
    loss = jax.block_until_ready(multi_torch_model(x, w, b, y, block_b=BLOCK_B))

    # Also exercise the auto-picked tile path once.
    probs_auto = jax.block_until_ready(multi_torch_model(x, w, b))

    # Light sanity checks against plain JAX reference.
    logits_ref = x @ w + b
    probs_ref = jax.nn.softmax(logits_ref, axis=1)
    logp_ref = jax.nn.log_softmax(logits_ref, axis=1)
    loss_ref = -jnp.mean(logp_ref[jnp.arange(B), y])
    assert jnp.allclose(probs, probs_ref, atol=2e-3), "probs mismatch"
    assert jnp.allclose(probs_auto, probs_ref, atol=2e-3), "probs (auto tile) mismatch"
    assert jnp.allclose(loss, loss_ref, atol=2e-3), "loss mismatch"

    print("KERNEL_OK")
</pallas_src>

<mosaic_0001>
module attributes {stable_mosaic.version = 11 : i64} {
  func.func @_forward_kernel(%arg0: i32, %arg1: memref<8x32xf32, #tpu.memory_space<vmem>>, %arg2: memref<32x3xf32, #tpu.memory_space<vmem>>, %arg3: memref<1x3xf32, #tpu.memory_space<vmem>>, %arg4: memref<8x3xf32, #tpu.memory_space<vmem>>) attributes {dimension_semantics = [#tpu.dimension_semantics<parallel>], iteration_bounds = array<i64: 2>, scalar_prefetch = 0 : i64, scratch_operands = 0 : i64, tpu.core_type = #tpu.core_type<tc>, window_params = [{transform_indices = @transform_0, window_bounds = array<i64: 8, 32>}, {pipeline_mode = #tpu.pipeline_mode<synchronous>, transform_indices = @transform_1, window_bounds = array<i64: 32, 3>}, {pipeline_mode = #tpu.pipeline_mode<synchronous>, transform_indices = @transform_2, window_bounds = array<i64: 1, 3>}, {transform_indices = @transform_3, window_bounds = array<i64: 8, 3>}]} {
    %c0 = arith.constant 0 : index
    %c0_0 = arith.constant 0 : index
    %0 = vector.load %arg1[%c0, %c0_0] : memref<8x32xf32, #tpu.memory_space<vmem>>, vector<8x32xf32>
    %c0_1 = arith.constant 0 : index
    %c0_2 = arith.constant 0 : index
    %1 = vector.load %arg2[%c0_1, %c0_2] : memref<32x3xf32, #tpu.memory_space<vmem>>, vector<32x3xf32>
    %cst = arith.constant dense<0.000000e+00> : vector<8x3xf32>
    %2 = tpu.matmul %0, %1, %cst {dimension_numbers = #tpu.dot_dimension_numbers<[1], [0], [0], [1], [0, 0, 1, 1], [], []>} : vector<8x32xf32>, vector<32x3xf32>, vector<8x3xf32> -> vector<8x3xf32>
    %c0_3 = arith.constant 0 : index
    %c0_4 = arith.constant 0 : index
    %3 = vector.load %arg3[%c0_3, %c0_4] : memref<1x3xf32, #tpu.memory_space<vmem>>, vector<1x3xf32>
    %4 = vector.broadcast %3 : vector<1x3xf32> to vector<8x3xf32>
    %5 = arith.addf %2, %4 : vector<8x3xf32>
    %cst_5 = arith.constant dense<0xFF800000> : vector<8xf32>
    %6 = vector.multi_reduction <maximumf>, %5, %cst_5 [1] : vector<8x3xf32> to vector<8xf32>
    %7 = vector.shape_cast %6 : vector<8xf32> to vector<8x1xf32>
    %8 = vector.broadcast %7 : vector<8x1xf32> to vector<8x3xf32>
    %9 = arith.subf %5, %8 : vector<8x3xf32>
    %10 = math.exp %9 : vector<8x3xf32>
    %cst_6 = arith.constant dense<0.000000e+00> : vector<8xf32>
    %11 = vector.multi_reduction <add>, %10, %cst_6 [1] : vector<8x3xf32> to vector<8xf32>
    %12 = vector.shape_cast %11 : vector<8xf32> to vector<8x1xf32>
    %13 = tpu.reciprocal %12 {approx = true} : vector<8x1xf32> -> vector<8x1xf32>
    %14 = vector.broadcast %13 : vector<8x1xf32> to vector<8x3xf32>
    %15 = arith.mulf %10, %14 : vector<8x3xf32>
    %c0_7 = arith.constant 0 : index
    %c0_8 = arith.constant 0 : index
    %16 = vector.load %arg4[%c0_7, %c0_8] : memref<8x3xf32, #tpu.memory_space<vmem>>, vector<8x3xf32>
    tpu.vector_store %arg4[%c0_7, %c0_8], %15 {strides = array<i32>} : memref<8x3xf32, #tpu.memory_space<vmem>>, vector<8x3xf32>,
    return
  }
  func.func @transform_0(%arg0: i32) -> (i32, i32) {
    %c0_i32 = arith.constant 0 : i32
    %c0_i32_0 = arith.constant 0 : i32
    return %arg0, %c0_i32 : i32, i32
  }
  func.func @transform_1(%arg0: i32) -> (i32, i32) {
    %c0_i32 = arith.constant 0 : i32
    %c0_i32_0 = arith.constant 0 : i32
    %c0_i32_1 = arith.constant 0 : i32
    return %c0_i32, %c0_i32_0 : i32, i32
  }
  func.func @transform_2(%arg0: i32) -> (i32, i32) {
    %c0_i32 = arith.constant 0 : i32
    %c0_i32_0 = arith.constant 0 : i32
    %c0_i32_1 = arith.constant 0 : i32
    return %c0_i32, %c0_i32_0 : i32, i32
  }
  func.func @transform_3(%arg0: i32) -> (i32, i32) {
    %c0_i32 = arith.constant 0 : i32
    %c0_i32_0 = arith.constant 0 : i32
    return %arg0, %c0_i32 : i32, i32
  }
}

</mosaic_0001>

<bundles_post_ra>
// kernel: tpu_custom_call.1
= control target key start
LH: loop header
LB: loop body
LE: loop exit
PB: predicated region body
PF: predicated region fallthrough
CT: control target
= control target key end

     0   :  { %s389_s12 = smov 0   ;;  %s427_s0 = inlined_call_operand.vmem [shape: f32[13,32], index: 0, kind: input, shape index: {}]   ;;  %s428_s1 = inlined_call_operand.vmem [shape: f32[32,3], index: 1, kind: input, shape index: {}]   ;;  %s429_s2 = inlined_call_operand.vmem [shape: f32[1,3], index: 2, kind: input, shape index: {}]   ;;  %s430_s3 = inlined_call_operand.vmem [shape: f32[13,3], index: 3, kind: output, shape index: {}]  }
   0x1 LB: > { %s318_s13 = sadd.s32 4294967295, %s365_s12   ;;  %p322_p0 = scmp.ge.s32.totalorder %s365_s12, 1  ;;  %s365_s12 = sphi %s389_s12, %s13_s12  }
   0x2   : > { %p136_p1 = scmp.lt.s32.totalorder %s365_s12, 3 }
   0x4   : > { %p137_p2 = pnand %p322_p0, %p136_p1 }
   0x5   : > { %p158_p3 = scmp.lt.s32.totalorder (!%p137_p2), %s318_s13, 1 }
   0x6   : > { %140 = sbr.rel (%p137_p2) target bundleno = 528 (0x210), region = 32 }
   0xb   : > { %v170_v0 = vld [vmem:[%s428_s1 + $0x18] sm:$0xff]  ;;  %v367_v1 = vmov 0.0   ;;  %v169_v2 = vld [vmem:[%s428_s1 + $0x10] sm:$0xff]  ;;  %vm368_vm0 = vmmov 0   ;;  %s432_s13 = smov (!%p158_p3, %s318_s13), 1  ;;  %v168_v3 = vld [vmem:[%s428_s1 + $0x8] sm:$0xff] }
   0xc   : > { %334 = vmatprep.subr.mxu0 %v367_v1  ;;  %342 = vmatprep.mubr.msk.f32.mxu0 %vm368_vm0, %v367_v1  ;;  %s323_s20 = sshll.u32 %s432_s13, 3  ;;  %v167_v4 = vld [vmem:[%s428_s1] sm:$0xff]  ;;  %vm178_vm1 = vcmask 261120   ;;  %vm252_vm2 = vcmask 23552  }
   0xd   : > { %335 = vmatpush3.msra.mxu0 %v170_v0  ;;  %s161_s25 = scalar_lea.vmem %s427_s0, %s323_s20  ;;  %v325_v6 = vld [vmem:[%s429_s2] ss:$0 sm:$0xff]  ;;  %s165_s30 = scalar_lea.vmem %s430_s3, %s323_s20 }
   0xe   : > { %336 = vmatprep.subr.mxu0 %v367_v1  ;;  %v166_v5 = vld [vmem:[%s161_s25] sm:$0xff] }
   0xf   : > { %337 = vmatpush3.msra.mxu0 %v169_v2 }
  0x10   : > { %338 = vmatprep.subr.mxu0 %v367_v1 }
  0x11   : > { %339 = vmatpush3.msra.mxu0 %v168_v3 }
  0x12   : > { %340 = vmatprep.subr.mxu0 %v367_v1 }
  0x13   : > { %341 = vmatpush3.msra.mxu0 %v167_v4 }
  0x14   : > { %343 = vmatmul.mubr.msk.f32.vlgmr.msra.gmra.mxu0 %vm178_vm1, %v166_v5 }
  0xd4   : > { %v248_v7 = vpop.f32.mrf.mxu0 }
  0xd5   : > { %v249_v8 = vadd.f32 %v325_v6, %v248_v7 }
  0xd6   : > { %v344_v9 = vpop.f32.mrf.mxu0 }
  0xd7   : > { %v253_v10 = vsel %vm252_vm2, %v249_v8, -inf }
  0xd8   : > { %254 = vmax.xlane.f32.xlu0 %v253_v10 }
 0x161   : > { %v255_v11 = vpop.xlane.xlu0 %254 }
 0x162   : > { %v256_v12 = vsub.f32 %v249_v8, %v255_v11 }
 0x164   : > { %v257_v13 = vmul.f32 1.442695, %v256_v12 }
 0x166   : > { %355 = vpow2.f32 %v257_v13 }
 0x173   : > { %v356_v14 = vpop.eup %355 }
 0x174   : > { %v259_v15 = vsel %vm252_vm2, %v356_v14, 0.0 }
 0x175   : > { %260 = vadd.xlane.f32.xlu0 %v259_v15 }
 0x1fe   : > { %v261_v16 = vpop.xlane.xlu0 %260 }
 0x1ff   : > { %357 = vrcp.f32 %v261_v16 }
 0x20c   : > { %v358_v17 = vpop.eup %357 }
 0x20d   : > { %v263_v18 = vmul.f32 %v358_v17, %v356_v14 }
 0x20f   : > { %264 = vst.msk [vmem:[%s165_s30] sm:$0xff] %vm252_vm2, %v263_v18 }
 0x210 PF: > { %s13_s12 = sadd.s32 1, %s365_s12  }
 0x211   : > { %p10_p4 = scmp.ge.s32.totalorder %s13_s12, 4  }
 0x213   :  { %12 = sbr.rel (!%p10_p4) target bundleno = 1 (0x1), region = 62 }

</bundles_post_ra>
